<compile_context>
chip_gen: v5e
topology: v5e:2x2
jax: 0.10.0
libtpu: 0.0.40
codegen_flags: <defaults>
</compile_context>

<pallas_src>
import jax
import jax.numpy as jnp
from jax.experimental import pallas as pl
from jax.experimental.pallas import tpu as pltpu

LANE = 128


def _round_up(n, m=LANE):
    return ((n + m - 1) // m) * m


def _mlp_kernel(x_ref,
                w1_ref, b1_ref,
                w2_ref, b2_ref,
                w3_ref, b3_ref,
                w4_ref, b4_ref,
                w5_ref, b5_ref,
                out_ref):
    """Fused forward: relu(fc1) -> relu(fc2) -> relu(fc3) -> relu(fc4) -> fc5.

    All refs are lane-padded to multiples of 128. Weights are bf16; activations
    are cast to bf16 only for the MXU operand, accumulation/bias/ReLU are f32.
    """
    def layer(h, w_ref, b_ref, relu):
        acc = jnp.dot(h.astype(jnp.bfloat16), w_ref[...],
                      preferred_element_type=jnp.float32)
        acc = acc + b_ref[...]          # (1, Np) f32 broadcast (kept in f32 for v5e)
        return jnp.maximum(acc, 0.0) if relu else acc

    h = x_ref[...]                      # (tile_b, 128) f32, no redundant cast
    h = layer(h, w1_ref, b1_ref, True)
    h = layer(h, w2_ref, b2_ref, True)
    h = layer(h, w3_ref, b3_ref, True)
    h = layer(h, w4_ref, b4_ref, True)
    out_ref[...] = layer(h, w5_ref, b5_ref, False)   # lane-dense (tile_b, 128) store


def _pick_tile_b(B):
    """Largest multiple-of-8 tile dividing B that leaves >= 2 grid steps."""
    for t in (512, 256, 128, 64, 32, 16, 8):
        if B % t == 0 and B // t >= 2:
            return t
    return B


def complex_nn_forward(x, params, *, tile_b=None):
    """x: (B, input_size) float32. params: w1..w5 as (in, out) f32, b1..b5 as (1, out) f32."""
    B, in_features = x.shape
    out_features = params["w5"].shape[1]

    if tile_b is None:
        tile_b = _pick_tile_b(B)
    assert B % tile_b == 0
    assert tile_b == B or tile_b % 8 == 0, "tile_b must be a multiple of 8 (or equal B)"

    # ---- lane-pad every feature dim to a multiple of 128; bf16 weights, f32 zero-padded biases
    padded = []
    dims = []
    for k in range(1, 6):
        w = params[f"w{k}"]
        b = params[f"b{k}"]
        K, N = w.shape
        Kp, Np = _round_up(K), _round_up(N)
        wp = jnp.zeros((Kp, Np), jnp.bfloat16).at[:K, :N].set(w.astype(jnp.bfloat16))
        bp = jnp.zeros((1, Np), jnp.float32).at[:, :N].set(b.astype(jnp.float32))
        padded += [wp, bp]
        dims.append((K, N))

    in_p = _round_up(in_features)
    out_p = _round_up(out_features)
    xp = jnp.zeros((B, in_p), jnp.float32).at[:, :in_features].set(x.astype(jnp.float32))

    # Weights/biases: whole array resident, same block every grid step.
    # (At these sizes 5x(128,128) bf16 is ~160 KB; if weights grow on v7x (64 MiB VMEM),
    #  consider pipeline_mode=pl.Buffered(1) on the weight specs to drop double-buffering.)
    def whole(a):
        return pl.BlockSpec(a.shape, lambda i: (0,) * a.ndim)

    in_specs = [pl.BlockSpec((tile_b, in_p), lambda i: (i, 0))]
    for a in padded:
        in_specs.append(whole(a))
    out_spec = pl.BlockSpec((tile_b, out_p), lambda i: (i, 0))

    flops = 2 * B * sum(K * N for K, N in dims)
    bytes_accessed = (xp.size * xp.dtype.itemsize
                      + B * out_p * 4
                      + sum(int(a.size) * a.dtype.itemsize for a in padded))
    cost = pl.CostEstimate(flops=flops, transcendentals=0,
                           bytes_accessed=bytes_accessed)

    out_padded = pl.pallas_call(
        _mlp_kernel,
        out_shape=jax.ShapeDtypeStruct((B, out_p), jnp.float32),
        grid_spec=pltpu.PrefetchScalarGridSpec(
            num_scalar_prefetch=0,
            grid=(B // tile_b,),
            in_specs=in_specs,
            out_specs=out_spec,
        ),
        compiler_params=pltpu.CompilerParams(
            dimension_semantics=("parallel",),      # batch axis shards across v7x's 2 TCs
            vmem_limit_bytes=32 * 1024 * 1024,      # safe on v5e/v6e/v7x; far above what we need
        ),
        cost_estimate=cost,
    )(xp, *padded)

    # Drop the padded lanes; kernel-side store stays full-vreg lane-dense.
    return out_padded[:, :out_features]


def init_params(key, input_size, hidden_size1, hidden_size2, output_size):
    """Deterministic init mimicking PyTorch nn.Linear default (uniform +-1/sqrt(fan_in)).

    Weights are stored already transposed to (in, out) so y = x @ W + b.
    """
    sizes = [(input_size, hidden_size1),
             (hidden_size1, hidden_size2),
             (hidden_size2, hidden_size2),
             (hidden_size2, hidden_size1),
             (hidden_size1, output_size)]
    params = {}
    for idx, (fan_in, fan_out) in enumerate(sizes, start=1):
        key, kw, kb = jax.random.split(key, 3)
        bound = 1.0 / (fan_in ** 0.5)
        params[f"w{idx}"] = jax.random.uniform(
            kw, (fan_in, fan_out), jnp.float32, -bound, bound)
        params[f"b{idx}"] = jax.random.uniform(
            kb, (1, fan_out), jnp.float32, -bound, bound)
    return params


def reference_forward(x, params):
    """Pure-JAX reference matching kernel numerics: bf16 matmul operands, f32 accumulation."""
    h = x.astype(jnp.float32)
    for k in range(1, 6):
        w = params[f"w{k}"].astype(jnp.bfloat16)
        acc = jnp.dot(h.astype(jnp.bfloat16), w,
                      preferred_element_type=jnp.float32) + params[f"b{k}"]
        h = jnp.maximum(acc, 0.0) if k < 5 else acc
    return h


if __name__ == "__main__":
    key = jax.random.PRNGKey(0)
    input_size, hidden_size1, hidden_size2, output_size = 32, 64, 48, 16
    batch = 16  # -> tile_b = 8, grid = (2,): pipelined and shardable across TCs

    kx, kp = jax.random.split(key)
    x = jax.random.normal(kx, (batch, input_size), jnp.float32)
    params = init_params(kp, input_size, hidden_size1, hidden_size2, output_size)

    out = complex_nn_forward(x, params)
    out = jax.block_until_ready(out)

    ref = reference_forward(x, params)
    assert out.shape == (batch, output_size)
    assert jnp.allclose(out, ref, atol=2e-3, rtol=2e-3), float(jnp.max(jnp.abs(out - ref)))

    print("KERNEL_OK")
</pallas_src>

<mosaic_0001>
module attributes {stable_mosaic.version = 11 : i64} {
  func.func @_mlp_kernel(%arg0: i32, %arg1: memref<8x128xf32, #tpu.memory_space<vmem>>, %arg2: memref<128x128xbf16, #tpu.memory_space<vmem>>, %arg3: memref<1x128xf32, #tpu.memory_space<vmem>>, %arg4: memref<128x128xbf16, #tpu.memory_space<vmem>>, %arg5: memref<1x128xf32, #tpu.memory_space<vmem>>, %arg6: memref<128x128xbf16, #tpu.memory_space<vmem>>, %arg7: memref<1x128xf32, #tpu.memory_space<vmem>>, %arg8: memref<128x128xbf16, #tpu.memory_space<vmem>>, %arg9: memref<1x128xf32, #tpu.memory_space<vmem>>, %arg10: memref<128x128xbf16, #tpu.memory_space<vmem>>, %arg11: memref<1x128xf32, #tpu.memory_space<vmem>>, %arg12: memref<8x128xf32, #tpu.memory_space<vmem>>) attributes {dimension_semantics = [#tpu.dimension_semantics<parallel>], iteration_bounds = array<i64: 2>, scalar_prefetch = 0 : i64, scratch_operands = 0 : i64, tpu.core_type = #tpu.core_type<tc>, window_params = [{transform_indices = @transform_0, window_bounds = array<i64: 8, 128>}, {pipeline_mode = #tpu.pipeline_mode<synchronous>, transform_indices = @transform_1, window_bounds = array<i64: 128, 128>}, {pipeline_mode = #tpu.pipeline_mode<synchronous>, transform_indices = @transform_2, window_bounds = array<i64: 1, 128>}, {pipeline_mode = #tpu.pipeline_mode<synchronous>, transform_indices = @transform_3, window_bounds = array<i64: 128, 128>}, {pipeline_mode = #tpu.pipeline_mode<synchronous>, transform_indices = @transform_4, window_bounds = array<i64: 1, 128>}, {pipeline_mode = #tpu.pipeline_mode<synchronous>, transform_indices = @transform_5, window_bounds = array<i64: 128, 128>}, {pipeline_mode = #tpu.pipeline_mode<synchronous>, transform_indices = @transform_6, window_bounds = array<i64: 1, 128>}, {pipeline_mode = #tpu.pipeline_mode<synchronous>, transform_indices = @transform_7, window_bounds = array<i64: 128, 128>}, {pipeline_mode = #tpu.pipeline_mode<synchronous>, transform_indices = @transform_8, window_bounds = array<i64: 1, 128>}, {pipeline_mode = #tpu.pipeline_mode<synchronous>, transform_indices = @transform_9, window_bounds = array<i64: 128, 128>}, {pipeline_mode = #tpu.pipeline_mode<synchronous>, transform_indices = @transform_10, window_bounds = array<i64: 1, 128>}, {transform_indices = @transform_11, window_bounds = array<i64: 8, 128>}]} {
    %c0 = arith.constant 0 : index
    %c0_0 = arith.constant 0 : index
    %0 = vector.load %arg1[%c0, %c0_0] : memref<8x128xf32, #tpu.memory_space<vmem>>, vector<8x128xf32>
    %1 = arith.truncf %0 : vector<8x128xf32> to vector<8x128xbf16>
    %c0_1 = arith.constant 0 : index
    %c0_2 = arith.constant 0 : index
    %2 = vector.load %arg2[%c0_1, %c0_2] : memref<128x128xbf16, #tpu.memory_space<vmem>>, vector<128x128xbf16>
    %cst = arith.constant dense<0.000000e+00> : vector<8x128xf32>
    %3 = tpu.matmul %1, %2, %cst {dimension_numbers = #tpu.dot_dimension_numbers<[1], [0], [0], [1], [0, 0, 1, 1], [], []>} : vector<8x128xbf16>, vector<128x128xbf16>, vector<8x128xf32> -> vector<8x128xf32>
    %c0_3 = arith.constant 0 : index
    %c0_4 = arith.constant 0 : index
    %4 = vector.load %arg3[%c0_3, %c0_4] : memref<1x128xf32, #tpu.memory_space<vmem>>, vector<1x128xf32>
    %5 = vector.broadcast %4 : vector<1x128xf32> to vector<8x128xf32>
    %6 = arith.addf %3, %5 : vector<8x128xf32>
    %cst_5 = arith.constant 0.000000e+00 : f32
    %7 = vector.broadcast %cst_5 : f32 to vector<8x128xf32>
    %8 = arith.maximumf %6, %7 : vector<8x128xf32>
    %9 = arith.truncf %8 : vector<8x128xf32> to vector<8x128xbf16>
    %c0_6 = arith.constant 0 : index
    %c0_7 = arith.constant 0 : index
    %10 = vector.load %arg4[%c0_6, %c0_7] : memref<128x128xbf16, #tpu.memory_space<vmem>>, vector<128x128xbf16>
    %cst_8 = arith.constant dense<0.000000e+00> : vector<8x128xf32>
    %11 = tpu.matmul %9, %10, %cst_8 {dimension_numbers = #tpu.dot_dimension_numbers<[1], [0], [0], [1], [0, 0, 1, 1], [], []>} : vector<8x128xbf16>, vector<128x128xbf16>, vector<8x128xf32> -> vector<8x128xf32>
    %c0_9 = arith.constant 0 : index
    %c0_10 = arith.constant 0 : index
    %12 = vector.load %arg5[%c0_9, %c0_10] : memref<1x128xf32, #tpu.memory_space<vmem>>, vector<1x128xf32>
    %13 = vector.broadcast %12 : vector<1x128xf32> to vector<8x128xf32>
    %14 = arith.addf %11, %13 : vector<8x128xf32>
    %cst_11 = arith.constant 0.000000e+00 : f32
    %15 = vector.broadcast %cst_11 : f32 to vector<8x128xf32>
    %16 = arith.maximumf %14, %15 : vector<8x128xf32>
    %17 = arith.truncf %16 : vector<8x128xf32> to vector<8x128xbf16>
    %c0_12 = arith.constant 0 : index
    %c0_13 = arith.constant 0 : index
    %18 = vector.load %arg6[%c0_12, %c0_13] : memref<128x128xbf16, #tpu.memory_space<vmem>>, vector<128x128xbf16>
    %cst_14 = arith.constant dense<0.000000e+00> : vector<8x128xf32>
    %19 = tpu.matmul %17, %18, %cst_14 {dimension_numbers = #tpu.dot_dimension_numbers<[1], [0], [0], [1], [0, 0, 1, 1], [], []>} : vector<8x128xbf16>, vector<128x128xbf16>, vector<8x128xf32> -> vector<8x128xf32>
    %c0_15 = arith.constant 0 : index
    %c0_16 = arith.constant 0 : index
    %20 = vector.load %arg7[%c0_15, %c0_16] : memref<1x128xf32, #tpu.memory_space<vmem>>, vector<1x128xf32>
    %21 = vector.broadcast %20 : vector<1x128xf32> to vector<8x128xf32>
    %22 = arith.addf %19, %21 : vector<8x128xf32>
    %cst_17 = arith.constant 0.000000e+00 : f32
    %23 = vector.broadcast %cst_17 : f32 to vector<8x128xf32>
    %24 = arith.maximumf %22, %23 : vector<8x128xf32>
    %25 = arith.truncf %24 : vector<8x128xf32> to vector<8x128xbf16>
    %c0_18 = arith.constant 0 : index
    %c0_19 = arith.constant 0 : index
    %26 = vector.load %arg8[%c0_18, %c0_19] : memref<128x128xbf16, #tpu.memory_space<vmem>>, vector<128x128xbf16>
    %cst_20 = arith.constant dense<0.000000e+00> : vector<8x128xf32>
    %27 = tpu.matmul %25, %26, %cst_20 {dimension_numbers = #tpu.dot_dimension_numbers<[1], [0], [0], [1], [0, 0, 1, 1], [], []>} : vector<8x128xbf16>, vector<128x128xbf16>, vector<8x128xf32> -> vector<8x128xf32>
    %c0_21 = arith.constant 0 : index
    %c0_22 = arith.constant 0 : index
    %28 = vector.load %arg9[%c0_21, %c0_22] : memref<1x128xf32, #tpu.memory_space<vmem>>, vector<1x128xf32>
    %29 = vector.broadcast %28 : vector<1x128xf32> to vector<8x128xf32>
    %30 = arith.addf %27, %29 : vector<8x128xf32>
    %cst_23 = arith.constant 0.000000e+00 : f32
    %31 = vector.broadcast %cst_23 : f32 to vector<8x128xf32>
    %32 = arith.maximumf %30, %31 : vector<8x128xf32>
    %33 = arith.truncf %32 : vector<8x128xf32> to vector<8x128xbf16>
    %c0_24 = arith.constant 0 : index
    %c0_25 = arith.constant 0 : index
    %34 = vector.load %arg10[%c0_24, %c0_25] : memref<128x128xbf16, #tpu.memory_space<vmem>>, vector<128x128xbf16>
    %cst_26 = arith.constant dense<0.000000e+00> : vector<8x128xf32>
    %35 = tpu.matmul %33, %34, %cst_26 {dimension_numbers = #tpu.dot_dimension_numbers<[1], [0], [0], [1], [0, 0, 1, 1], [], []>} : vector<8x128xbf16>, vector<128x128xbf16>, vector<8x128xf32> -> vector<8x128xf32>
    %c0_27 = arith.constant 0 : index
    %c0_28 = arith.constant 0 : index
    %36 = vector.load %arg11[%c0_27, %c0_28] : memref<1x128xf32, #tpu.memory_space<vmem>>, vector<1x128xf32>
    %37 = vector.broadcast %36 : vector<1x128xf32> to vector<8x128xf32>
    %38 = arith.addf %35, %37 : vector<8x128xf32>
    %c0_29 = arith.constant 0 : index
    %c0_30 = arith.constant 0 : index
    %39 = vector.load %arg12[%c0_29, %c0_30] : memref<8x128xf32, #tpu.memory_space<vmem>>, vector<8x128xf32>
    tpu.vector_store %arg12[%c0_29, %c0_30], %38 {strides = array<i32>} : memref<8x128xf32, #tpu.memory_space<vmem>>, vector<8x128xf32>,
    return
  }
  func.func @transform_0(%arg0: i32) -> (i32, i32) {
    %c0_i32 = arith.constant 0 : i32
    %c0_i32_0 = arith.constant 0 : i32
    return %arg0, %c0_i32 : i32, i32
  }
  func.func @transform_1(%arg0: i32) -> (i32, i32) {
    %c0_i32 = arith.constant 0 : i32
    %c0_i32_0 = arith.constant 0 : i32
    %c0_i32_1 = arith.constant 0 : i32
    return %c0_i32, %c0_i32_0 : i32, i32
  }
  func.func @transform_2(%arg0: i32) -> (i32, i32) {
    %c0_i32 = arith.constant 0 : i32
    %c0_i32_0 = arith.constant 0 : i32
    %c0_i32_1 = arith.constant 0 : i32
    return %c0_i32, %c0_i32_0 : i32, i32
  }
  func.func @transform_3(%arg0: i32) -> (i32, i32) {
    %c0_i32 = arith.constant 0 : i32
    %c0_i32_0 = arith.constant 0 : i32
    %c0_i32_1 = arith.constant 0 : i32
    return %c0_i32, %c0_i32_0 : i32, i32
  }
  func.func @transform_4(%arg0: i32) -> (i32, i32) {
    %c0_i32 = arith.constant 0 : i32
    %c0_i32_0 = arith.constant 0 : i32
    %c0_i32_1 = arith.constant 0 : i32
    return %c0_i32, %c0_i32_0 : i32, i32
  }
  func.func @transform_5(%arg0: i32) -> (i32, i32) {
    %c0_i32 = arith.constant 0 : i32
    %c0_i32_0 = arith.constant 0 : i32
    %c0_i32_1 = arith.constant 0 : i32
    return %c0_i32, %c0_i32_0 : i32, i32
  }
  func.func @transform_6(%arg0: i32) -> (i32, i32) {
    %c0_i32 = arith.constant 0 : i32
    %c0_i32_0 = arith.constant 0 : i32
    %c0_i32_1 = arith.constant 0 : i32
    return %c0_i32, %c0_i32_0 : i32, i32
  }
  func.func @transform_7(%arg0: i32) -> (i32, i32) {
    %c0_i32 = arith.constant 0 : i32
    %c0_i32_0 = arith.constant 0 : i32
    %c0_i32_1 = arith.constant 0 : i32
    return %c0_i32, %c0_i32_0 : i32, i32
  }
  func.func @transform_8(%arg0: i32) -> (i32, i32) {
    %c0_i32 = arith.constant 0 : i32
    %c0_i32_0 = arith.constant 0 : i32
    %c0_i32_1 = arith.constant 0 : i32
    return %c0_i32, %c0_i32_0 : i32, i32
  }
  func.func @transform_9(%arg0: i32) -> (i32, i32) {
    %c0_i32 = arith.constant 0 : i32
    %c0_i32_0 = arith.constant 0 : i32
    %c0_i32_1 = arith.constant 0 : i32
    return %c0_i32, %c0_i32_0 : i32, i32
  }
  func.func @transform_10(%arg0: i32) -> (i32, i32) {
    %c0_i32 = arith.constant 0 : i32
    %c0_i32_0 = arith.constant 0 : i32
    %c0_i32_1 = arith.constant 0 : i32
    return %c0_i32, %c0_i32_0 : i32, i32
  }
  func.func @transform_11(%arg0: i32) -> (i32, i32) {
    %c0_i32 = arith.constant 0 : i32
    %c0_i32_0 = arith.constant 0 : i32
    return %arg0, %c0_i32 : i32, i32
  }
}

</mosaic_0001>

<bundles_post_ra>
// kernel: tpu_custom_call.1
= control target key start
LH: loop header
LB: loop body
LE: loop exit
PB: predicated region body
PF: predicated region fallthrough
CT: control target
= control target key end

     0   :  { %s1882_s0 = inlined_call_operand.hbm [shape: f32[16,128], index: 0, kind: input, shape index: {}]   ;;  %s1883_s1 = inlined_call_operand.hbm [shape: bf16[128,128], index: 1, kind: input, shape index: {}]   ;;  %s1884_s2 = inlined_call_operand.vmem [shape: f32[1,128], index: 2, kind: input, shape index: {}]   ;;  %s1885_s3 = inlined_call_operand.hbm [shape: bf16[128,128], index: 3, kind: input, shape index: {}]   ;;  %s1886_s4 = inlined_call_operand.vmem [shape: f32[1,128], index: 4, kind: input, shape index: {}]   ;;  %s1887_s5 = inlined_call_operand.hbm [shape: bf16[128,128], index: 5, kind: input, shape index: {}]   ;;  %s1888_s6 = inlined_call_operand.vmem [shape: f32[1,128], index: 6, kind: input, shape index: {}]   ;;  %s1889_s7 = inlined_call_operand.hbm [shape: bf16[128,128], index: 7, kind: input, shape index: {}]   ;;  %s1890_s8 = inlined_call_operand.vmem [shape: f32[1,128], index: 8, kind: input, shape index: {}]   ;;  %s1891_s9 = inlined_call_operand.hbm [shape: bf16[128,128], index: 9, kind: input, shape index: {}]   ;;  %s1892_s10 = inlined_call_operand.vmem [shape: f32[1,128], index: 10, kind: input, shape index: {}]   ;;  %s1893_s11 = inlined_call_operand.hbm [shape: f32[16,128], index: 11, kind: output, shape index: {}]  }
   0x1   :  { %1894 = sst [smem:[#allocation19_spill]] %s1883_s1 }
   0x2   :  { %1895 = sst [smem:[#allocation20_spill]] %s1885_s3 }
   0x3   :  { %1896 = sst [smem:[#allocation21_spill]] %s1887_s5 }
   0x4   :  { %1897 = sst [smem:[#allocation22_spill]] %s1889_s7 }
   0x5   :  { %1898 = sst [smem:[#allocation23_spill]] %s1891_s9 }
   0x6   :  { %16 = vsyncpa [#allocation3], 0 }
   0x7   :  { %18 = vsyncpa [#allocation3 + $0x1], 0 }
   0x8   :  { %19 = vsyncpa [#allocation6], 0 }
   0x9   :  { %20 = vsyncpa [#allocation9], 0 }
   0xa   :  { %21 = vsyncpa [#allocation12], 0 }
   0xb   :  { %22 = vsyncpa [#allocation4], 0 }
   0xc   :  { %24 = vsyncpa [#allocation4 + $0x1], 0  ;;  %s1690_s17 = smov 0   ;;  %s1692_s18 = smov 0  }
   0xd   :  { %s1694_s19 = smov 0   ;;  %s1696_s20 = smov 0  }
   0xe LB: > { %s1899_s1 = sld [smem:[#allocation19_spill]]  ;;  %s1714_s24 = sadd.s32 4294967295, %s1621_s20   ;;  %s1621_s20 = sphi %s1696_s20, %s1914_s20   ;;  %s1617_s19 = sphi %s1694_s19, %s1913_s19   ;;  %s1613_s18 = sphi %s1692_s18, %s1912_s18   ;;  %s1609_s17 = sphi %s1690_s17, %s1911_s17  }
   0xf   : > { %p1038_p0 = scmp.ge.s32.totalorder %s1621_s20, 1  ;;  %p51_p1 = scmp.eq.s32.totalorder %s1714_s24, 0 }
  0x10   : > { %p297_p2 = scmp.lt.s32.totalorder %s1621_s20, 3  ;;  %s1623_s26 = smov [#allocation5]  }
  0x11   : > { %s310_s27 = sshll.u32 %s1623_s26, 4  ;;  %s1901_s5 = sld [smem:[#allocation21_spill]]  ;;  %s311_s27 = int_to_ptr.vmem [resolvable:$true] %s310_s27 }
  0x12   : > { %p1719_p3 = pnand %p1038_p0, %p297_p2  ;;  %s1903_s3 = sld [smem:[#allocation20_spill]] }
  0x13   : > { %s1624_s16 = smov [#allocation8]   ;;  %s1625_s22 = smov 64  }
  0x14   : > { %s308_s23 = sshll.u32 %s1899_s1, 4  ;;  %p1283_p4 = pneg %p1719_p3  ;;  %s309_s23 = int_to_ptr.hbm [resolvable:$true] %s308_s23 }
  0x15   : > { %s344_s21 = sshll.u32 %s1624_s16, 4  ;;  %s1626_s26 = smov 4   ;;  %s345_s21 = int_to_ptr.vmem [resolvable:$true] %s344_s21 }
  0x16   : > { %p1731_p6 = pnand %p1283_p4, %p51_p1  ;;  %s1904_s7 = sld [smem:[#allocation22_spill]] }
  0x17   : > { %s342_s30 = sshll.u32 %s1901_s5, 4  ;;  %s1627_s5 = smov [#allocation7]   ;;  %s343_s30 = int_to_ptr.hbm [resolvable:$true] %s342_s30 }
  0x18   : > { %s325_s15 = sshll.u32 %s1903_s3, 4  ;;  %s327_s13 = sshll.u32 %s1627_s5, 4  ;;  %s326_s15 = int_to_ptr.hbm [resolvable:$true] %s325_s15  ;;  %s328_s13 = int_to_ptr.vmem [resolvable:$true] %s327_s13 }
  0x19   : > { %1286 = dma.hbm_to_vmem [thread:$0]  (!%p1731_p6), %s309_s23, 1024, %s311_s27, [#allocation6], %s1625_s22, %s1625_s22, %s1626_s26  }
  0x1a   : > { %1292 = dma.hbm_to_vmem [thread:$0]  (!%p1731_p6), %s343_s30, 1024, %s345_s21, [#allocation9], %s1625_s22, %s1625_s22, %s1626_s26  }
  0x1b   : > { %1289 = dma.hbm_to_vmem [thread:$0]  (!%p1731_p6), %s326_s15, 1024, %s328_s13, [#allocation6], %s1625_s22, %s1625_s22, %s1626_s26  }
  0x1c   : > { %s359_s1 = sshll.u32 %s1904_s7, 4  ;;  %s1628_s23 = smov [#allocation10]   ;;  %s360_s1 = int_to_ptr.hbm [resolvable:$true] %s359_s1 }
  0x1d   : > { %s361_s27 = sshll.u32 %s1628_s23, 4  ;;  %s1905_s9 = sld [smem:[#allocation23_spill]]  ;;  %s362_s27 = int_to_ptr.vmem [resolvable:$true] %s361_s27 }
  0x1e   : > { %1295 = dma.hbm_to_vmem [thread:$0]  (!%p1731_p6), %s360_s1, 1024, %s362_s27, [#allocation9], %s1625_s22, %s1625_s22, %s1626_s26  }
  0x1f   : > { %s1629_s5 = smov [#allocation11]   ;;  %s1037_s15 = sadd.s32 4294967294, %s1621_s20  }
  0x20   : > { %s378_s21 = sshll.u32 %s1629_s5, 4  ;;  %s1756_s28 = sadd.s32 1, %s1621_s20   ;;  %s379_s21 = int_to_ptr.vmem [resolvable:$true] %s378_s21 }
  0x21   : > { %s37_s29 = sadd.s32 1, %s1617_s19  ;;  %s34_s13 = ssub.s32 %s1621_s20, %s1756_s28 }
  0x22   : > { %p44_p7 = scmp.ne.s32.totalorder %s1617_s19, %s1613_s18  ;;  %p35_p8 = scmp.eq.s32.totalorder %s34_s13, 0 }
  0x23   : > { %s376_s16 = sshll.u32 %s1905_s9, 4  ;;  %p45_p9 = scmp.eq.s32.totalorder %s1621_s20, 0  ;;  %s377_s16 = int_to_ptr.hbm [resolvable:$true] %s376_s16 }
  0x24   : > { %1298 = dma.hbm_to_vmem [thread:$0]  (!%p1731_p6), %s377_s16, 1024, %s379_s21, [#allocation12], %s1625_s22, %s1625_s22, %s1626_s26  }
  0x25   : > { %p50_p10 = scmp.ne.s32.totalorder %s1613_s18, %s1609_s17  ;;  %p284_p11 = scmp.eq.s32.totalorder %s1714_s24, 1 }
  0x26   : > { %s1768_s1 = scalar_select %p35_p8, %s1617_s19, %s37_s29  }
  0x27   : > { %p1772_p12 = por %p51_p1, %p50_p10  ;;  %p1776_p13 = por %p284_p11, %p44_p7 }
  0x28   : > { %p290_p0 = scmp.eq.s32.totalorder %s1037_s15, 1  ;;  %p46_p2 = por %p45_p9, %p44_p7 }
  0x29   : > { %s395_s26 = sand.u32 1, %s1617_s19   ;;  %p1312_p6 = scmp.lt.s32.totalorder %s1621_s20, 2 }
  0x2a   : > { %p1781_p4 = por %p290_p0, %p50_p10  ;;  %s1045_s27 = sshll.u32 %s395_s26, 3 }
  0x2b   : > { %s1046_s30 = sshll.u32 %s1621_s20, 3  ;;  %s399_s29 = scalar_lea.vmem [#allocation2], %s1045_s27 }
  0x2c   : > { %s403_s5 = scalar_lea.hbm %s1882_s0, %s1046_s30  ;;  %s407_s13 = sshll.u32 %s399_s29, 4  ;;  %s408_s13 = int_to_ptr.vmem [resolvable:$true] %s407_s13 }
  0x2d   : > { %s405_s21 = sshll.u32 %s403_s5, 4  ;;  %p1790_p8 = pnand %p1312_p6, %p46_p2  ;;  %s406_s21 = int_to_ptr.hbm [resolvable:$true] %s405_s21 }
  0x2e   : > { %s396_s3 = scalar_lea.sflag [#allocation3], %s395_s26  ;;  %s1513_s7 = sshra.s32 %s406_s21, 4  ;;  %s1514_s7 = int_to_ptr.hbm [resolvable:$true] %s1513_s7 }
  0x2f   : > { %s1515_s9 = scalar_lea.hbm %s1514_s7, 8  ;;  %p1517_p9 = pneg %p1790_p8 }
  0x30   : > { %p1516_p7 = scmp.ne.s32.totalorder %s1514_s7, %s1515_s9  ;;  %s1520_s27 = scalar_lea.hbm %s1882_s0, 16 }
  0x31   : > { %p1521_p0 = scmp.lt.s32.totalorder %s1514_s7, %s1882_s0  ;;  %p1522_p2 = scmp.lt.s32.totalorder %s1520_s27, %s1515_s9 }
  0x32   : > { %p1518_p10 = pnand %p1517_p9, %p1516_p7 }
  0x33   : > { %p1523_p6 = por %p1522_p2, %p1521_p0 }
  0x34   : > { %p1519_p11 = pneg %p1518_p10 }
  0x36   : > { %p1524_p5 = pnand %p1523_p6, %p1519_p11 }
  0x38   : > { %1527 = shalt.err (!%p1524_p5)
}
  0x39   : > { %1302 = dma.hbm_to_vmem [thread:$0]  (!%p1790_p8), %s406_s21, 128, %s408_s13, %s396_s3  }
  0x3a   : > { %416 = sbr.rel (%p1719_p3) target bundleno = 776 (0x308), region = 64  ;;  %s1807_s26 = sand.u32 (!%p1719_p3), 1, %s1613_s18  }
  0x3b   : > { %s1048_s29 = sshll.u32 (!%p1719_p3), %s1807_s26, 3  ;;  %s419_s30 = scalar_lea.sflag (!%p1719_p3), [#allocation3], %s1807_s26 }
  0x3c   : > { %s1813_s7 = scalar_lea.vmem (!%p1719_p3), [#allocation2], %s1048_s29 }
  0x3f   : > { %1588 = dma.done.wait (%p1772_p12), %s419_s30, 128  }
  0x40   : > { %1590 = vsyncadd (%p1772_p12), %s419_s30, 4294967168 }
  0x41   : > { %1592 = dma.done.wait (%p51_p1), [#allocation6], 2048  }
  0x42   : > { %1594 = vsyncadd (%p51_p1), [#allocation6], 4294965248 }
  0x43   : > { %1596 = dma.done.wait (%p51_p1), [#allocation9], 2048  }
  0x44   : > { %1598 = vsyncadd (%p51_p1), [#allocation9], 4294965248 }
  0x45   : > { %1600 = dma.done.wait (%p51_p1), [#allocation12], 1024  }
  0x46   : > { %1602 = vsyncadd (%p51_p1), [#allocation12], 4294966272  ;;  %v1226_v0 = vld [vmem:[#allocation5 + $0x38] sm:$0xff]  ;;  %v1225_v1 = vld [vmem:[#allocation5 + $0x30] sm:$0xff]  ;;  %s1216_s27 = sshll.u32 %s1714_s24, 3  ;;  %s486_s9 = scalar_lea.vmem [#allocation13], %s1048_s29 }
  0x47   : > { %557 = vmatpush.bf16.msra.mxu0 %v1226_v0  ;;  %v1234_v2 = vld [vmem:[#allocation7 + $0x38] sm:$0xff]  ;;  %v1224_v3 = vld [vmem:[#allocation5 + $0x28] sm:$0xff]  ;;  %v1233_v4 = vld [vmem:[#allocation7 + $0x30] sm:$0xff]  ;;  %s914_s30 = scalar_lea.hbm %s1893_s11, %s1216_s27  ;;  %s916_s25 = sshll.u32 %s486_s9, 4  ;;  %s917_s25 = int_to_ptr.vmem [resolvable:$true] %s916_s25 }
  0x48   : > { %640 = vmatpush.bf16.msra.mxu1 %v1234_v2  ;;  %v1232_v5 = vld [vmem:[#allocation7 + $0x28] sm:$0xff]  ;;  %v1223_v6 = vld [vmem:[#allocation5 + $0x20] sm:$0xff]  ;;  %v1222_v8 = vld [vmem:[#allocation5 + $0x18] sm:$0xff]  ;;  %s918_s12 = sshll.u32 %s914_s30, 4  ;;  %s904_s21 = scalar_lea.sflag [#allocation4], %s1807_s26  ;;  %s919_s12 = int_to_ptr.hbm [resolvable:$true] %s918_s12 }
  0x49   : > { %v1231_v7 = vld [vmem:[#allocation7 + $0x20] sm:$0xff]  ;;  %v1230_v9 = vld [vmem:[#allocation7 + $0x18] sm:$0xff]  ;;  %v1221_v10 = vld [vmem:[#allocation5 + $0x10] sm:$0xff]  ;;  %s1557_s24 = sshra.s32 %s919_s12, 4  ;;  %s1563_s27 = scalar_lea.hbm %s1893_s11, 16  ;;  %s1558_s24 = int_to_ptr.hbm [resolvable:$true] %s1557_s24 }
  0x4a   : > { %v1229_v11 = vld [vmem:[#allocation7 + $0x10] sm:$0xff]  ;;  %v1220_v12 = vld [vmem:[#allocation5 + $0x8] sm:$0xff]  ;;  %v1219_v13 = vld [vmem:[#allocation5] sm:$0xff]  ;;  %s1559_s13 = scalar_lea.hbm %s1558_s24, 8  ;;  %p1564_p12 = scmp.lt.s32.totalorder %s1558_s24, %s1893_s11 }
  0x4b   : > { %558 = vmatpush.bf16.msra.mxu0 %v1225_v1  ;;  %v487_v14 = vld [vmem:[%s1813_s7] sm:$0xff]  ;;  %v1228_v16 = vld [vmem:[#allocation7 + $0x8] sm:$0xff]  ;;  %v1227_v17 = vld [vmem:[#allocation7] sm:$0xff]  ;;  %p1560_p1 = scmp.ne.s32.totalorder %s1558_s24, %s1559_s13  ;;  %p1565_p8 = scmp.lt.s32.totalorder %s1563_s27, %s1559_s13 }
  0x4c   : > { %641 = vmatpush.bf16.msra.mxu1 %v1233_v4  ;;  %v488_v15 = vpack.c.bf16 %v487_v14, %v487_v14  ;;  %v1242_v18 = vld [vmem:[#allocation8 + $0x38] sm:$0xff]  ;;  %v1241_v19 = vld [vmem:[#allocation8 + $0x30] sm:$0xff]  ;;  %v1240_v20 = vld [vmem:[#allocation8 + $0x28] sm:$0xff] }
  0x4d   : > { %723 = vmatpush.bf16.msra.mxu2 %v1242_v18  ;;  %v1239_v21 = vld [vmem:[#allocation8 + $0x20] sm:$0xff]  ;;  %v1238_v22 = vld [vmem:[#allocation8 + $0x18] sm:$0xff]  ;;  %v1237_v23 = vld [vmem:[#allocation8 + $0x10] sm:$0xff]  ;;  %p1561_p3 = pnand %p1560_p1, %p1776_p13  ;;  %p1566_p7 = por %p1565_p8, %p1564_p12 }
  0x4e   : > { %v1358_v24 = vld [vmem:[%s1884_s2] ss:$0 sm:$0xff]  ;;  %v1236_v30 = vld [vmem:[#allocation8 + $0x8] sm:$0xff]  ;;  %v1235_v31 = vld [vmem:[#allocation8] sm:$0xff] }
  0x4f   : > { %559 = vmatpush.bf16.msra.mxu0 %v1224_v3  ;;  %v1250_v32 = vld [vmem:[#allocation10 + $0x38] sm:$0xff]  ;;  %v1249_v33 = vld [vmem:[#allocation10 + $0x30] sm:$0xff]  ;;  %v1248_v34 = vld [vmem:[#allocation10 + $0x28] sm:$0xff]  ;;  %p1562_p5 = pneg %p1561_p3 }
  0x50   : > { %642 = vmatpush.bf16.msra.mxu1 %v1232_v5  ;;  %806 = vmatpush.bf16.msra.mxu3 %v1250_v32  ;;  %v1247_v35 = vld [vmem:[#allocation10 + $0x20] sm:$0xff]  ;;  %v1246_v36 = vld [vmem:[#allocation10 + $0x18] sm:$0xff]  ;;  %v1245_v37 = vld [vmem:[#allocation10 + $0x10] sm:$0xff] }
  0x51   : > { %724 = vmatpush.bf16.msra.mxu2 %v1241_v19  ;;  %v1359_v38 = vld [vmem:[%s1886_s4] ss:$0 sm:$0xff]  ;;  %v1244_v44 = vld [vmem:[#allocation10 + $0x8] sm:$0xff]  ;;  %v1243_v45 = vld [vmem:[#allocation10] sm:$0xff]  ;;  %p1567_p9 = pnand %p1566_p7, %p1562_p5 }
  0x52   : > { %v1258_v46 = vld [vmem:[#allocation11 + $0x38] sm:$0xff]  ;;  %v1257_v47 = vld [vmem:[#allocation11 + $0x30] sm:$0xff]  ;;  %v1256_v48 = vld [vmem:[#allocation11 + $0x28] sm:$0xff] }
  0x53   : > { %560 = vmatpush.bf16.msra.mxu0 %v1223_v6  ;;  %v1255_v49 = vld [vmem:[#allocation11 + $0x20] sm:$0xff]  ;;  %v1254_v50 = vld [vmem:[#allocation11 + $0x18] sm:$0xff]  ;;  %v1253_v51 = vld [vmem:[#allocation11 + $0x10] sm:$0xff] }
  0x54   : > { %643 = vmatpush.bf16.msra.mxu1 %v1231_v7  ;;  %807 = vmatpush.bf16.msra.mxu3 %v1249_v33  ;;  %v1360_v52 = vld [vmem:[%s1888_s6] ss:$0 sm:$0xff]  ;;  %v1252_v58 = vld [vmem:[#allocation11 + $0x8] sm:$0xff]  ;;  %v1251_v59 = vld [vmem:[#allocation11] sm:$0xff] }
  0x55   : > { %725 = vmatpush.bf16.msra.mxu2 %v1240_v20  ;;  %v1361_v60 = vld [vmem:[%s1890_s8] ss:$0 sm:$0xff] }
  0x56   : > { %v1362_v2 = vld [vmem:[%s1892_s10] ss:$0 sm:$0xff] }
  0x57   : > { %561 = vmatpush.bf16.msra.mxu0 %v1222_v8 }
  0x58   : > { %644 = vmatpush.bf16.msra.mxu1 %v1230_v9  ;;  %808 = vmatpush.bf16.msra.mxu3 %v1248_v34 }
  0x59   : > { %726 = vmatpush.bf16.msra.mxu2 %v1239_v21 }
  0x5b   : > { %562 = vmatpush.bf16.msra.mxu0 %v1221_v10 }
  0x5c   : > { %645 = vmatpush.bf16.msra.mxu1 %v1229_v11  ;;  %809 = vmatpush.bf16.msra.mxu3 %v1247_v35 }
  0x5d   : > { %727 = vmatpush.bf16.msra.mxu2 %v1238_v22 }
  0x5f   : > { %563 = vmatpush.bf16.msra.mxu0 %v1220_v12 }
  0x60   : > { %646 = vmatpush.bf16.msra.mxu1 %v1228_v16  ;;  %810 = vmatpush.bf16.msra.mxu3 %v1246_v36 }
  0x61   : > { %728 = vmatpush.bf16.msra.mxu2 %v1237_v23 }
  0x63   : > { %564 = vmatpush.bf16.msra.mxu0 %v1219_v13 }
  0x64   : > { %647 = vmatpush.bf16.msra.mxu1 %v1227_v17  ;;  %811 = vmatpush.bf16.msra.mxu3 %v1245_v37 }
  0x65   : > { %729 = vmatpush.bf16.msra.mxu2 %v1236_v30 }
  0x66   : > { %565 = vmatmul.bf16.vlgmr.msra.gmra.mxu0 %v488_v15 }
  0x67   : > { %889 = vmatpush.bf16.msrb.mxu0 %v1258_v46 }
  0x68   : > { %812 = vmatpush.bf16.msra.mxu3 %v1244_v44 }
  0x69   : > { %730 = vmatpush.bf16.msra.mxu2 %v1235_v31 }
  0x6b   : > { %890 = vmatpush.bf16.msrb.mxu0 %v1257_v47 }
  0x6c   : > { %813 = vmatpush.bf16.msra.mxu3 %v1243_v45 }
  0x6f   : > { %891 = vmatpush.bf16.msrb.mxu0 %v1256_v48 }
  0x73   : > { %892 = vmatpush.bf16.msrb.mxu0 %v1255_v49 }
  0x77   : > { %893 = vmatpush.bf16.msrb.mxu0 %v1254_v50 }
  0x7b   : > { %894 = vmatpush.bf16.msrb.mxu0 %v1253_v51 }
  0x7f   : > { %895 = vmatpush.bf16.msrb.mxu0 %v1252_v58 }
  0x83   : > { %896 = vmatpush.bf16.msrb.mxu0 %v1251_v59 }
  0xe3   : > { %v566_v25 = vpop.f32.mrf.mxu0 }
  0xe4   : > { %v567_v26 = vadd.f32 %v1358_v24, %v566_v25 }
  0xe6   : > { %v570_v27 = vmax.f32 %v567_v26, 0.0 }
  0xe8   : > { %v571_v28 = vpack.c.bf16 %v570_v27, %v570_v27 }
  0xea   : > { %648 = vmatmul.bf16.vlgmr.msra.gmra.mxu1 %v571_v28 }
  0xeb   : > { %v568_v29 = vpop.f32.mrf.mxu0 }
 0x167   : > { %v649_v39 = vpop.f32.mrf.mxu1 }
 0x168   : > { %v650_v40 = vadd.f32 %v1359_v38, %v649_v39 }
 0x16a   : > { %v653_v41 = vmax.f32 %v650_v40, 0.0 }
 0x16c   : > { %v654_v42 = vpack.c.bf16 %v653_v41, %v653_v41 }
 0x16e   : > { %731 = vmatmul.bf16.vlgmr.msra.gmra.mxu2 %v654_v42 }
 0x16f   : > { %v651_v43 = vpop.f32.mrf.mxu1 }
 0x1f1   : > { %v732_v53 = vpop.f32.mrf.mxu2 }
 0x1f2   : > { %v733_v54 = vadd.f32 %v1360_v52, %v732_v53 }
 0x1f4   : > { %v736_v55 = vmax.f32 %v733_v54, 0.0 }
 0x1f6   : > { %v737_v56 = vpack.c.bf16 %v736_v55, %v736_v55 }
 0x1f8   : > { %814 = vmatmul.bf16.vlgmr.msra.gmra.mxu3 %v737_v56 }
 0x1f9   : > { %v734_v57 = vpop.f32.mrf.mxu2 }
 0x27b   : > { %v815_v61 = vpop.f32.mrf.mxu3 }
 0x27c   : > { %v816_v62 = vadd.f32 %v1361_v60, %v815_v61 }
 0x27e   : > { %v819_v63 = vmax.f32 %v816_v62, 0.0 }
 0x280   : > { %v820_v0 = vpack.c.bf16 %v819_v63, %v819_v63 }
 0x282   : > { %897 = vmatmul.bf16.vlgmr.msrb.gmra.mxu0 %v820_v0 }
 0x283   : > { %v817_v1 = vpop.f32.mrf.mxu3 }
 0x2ff   : > { %v898_v3 = vpop.f32.mrf.mxu0 }
 0x300   : > { %v899_v4 = vadd.f32 %v1362_v2, %v898_v3 }
 0x302   : > { %902 = vst [vmem:[%s486_s9] sm:$0xff] %v899_v4 }
 0x303   : > { %1570 = shalt.err (!%p1567_p9)
}
 0x304   : > { %1281 = dma.vmem_to_hbm [thread:$0]  (%p1776_p13), %s917_s25, 128, %s919_s12, %s904_s21  }
 0x307   : > { %v900_v5 = vpop.f32.mrf.mxu0 }
 0x308 PF: > { %s930_s26 = sand.u32 1, %s1609_s17   ;;  %p1910_p10 = scmp.ge.s32.totalorder %s1621_s20, 2 }
 0x309   : > { %s931_s5 = scalar_lea.sflag [#allocation4], %s930_s26 }
 0x30a   : > { %p1304_p11 = pnand %p1910_p10, %p1781_p4 }
 0x30c   : > { %p1305_p0 = pneg %p1304_p11 }
 0x30e   : > { %1604 = dma.done.wait (%p1305_p0), %s931_s5, 128  }
 0x30f   : > { %1606 = vsyncadd (%p1305_p0), %s931_s5, 4294967168  ;;  %p27_p2 = scmp.ge.s32.totalorder %s1756_s28, 4   ;;  %s1911_s17 = smov %s1613_s18 }
 0x310   : > { %s1912_s18 = smov %s1617_s19  ;;  %s1913_s19 = smov %s1768_s1 }
 0x311   : > { %s1914_s20 = smov %s1756_s28  ;;  %29 = sbr.rel (!%p27_p2) target bundleno = 14 (0xe), region = 129 }
 0x316   :  { %937 = vsyncpa [#allocation3], 1 }
 0x317   :  { %939 = vsyncpa [#allocation3 + $0x1], 1 }
 0x318   :  { %940 = vsyncpa [#allocation6], 1 }
 0x319   :  { %941 = vsyncpa [#allocation9], 1 }
 0x31a   :  { %942 = vsyncpa [#allocation12], 1 }
 0x31b   :  { %943 = vsyncpa [#allocation4], 1 }
 0x31c   :  { %945 = vsyncpa [#allocation4 + $0x1], 1 }

</bundles_post_ra>
